<compile_context>
chip_gen: v7x
topology: tpu7x:2x2x1
jax: 0.10.0
libtpu: 0.0.40
codegen_flags: <defaults>
</compile_context>

<pallas_src>
import functools

import jax
import jax.numpy as jnp
from jax.experimental import pallas as pl
from jax.experimental.pallas import tpu as pltpu

IN_DIM = 98
H1_DIM = 200
H2_DIM = 128
OUT_DIM = 4


def _round_up(x, m):
    return ((x + m - 1) // m) * m


def _mlp_kernel(x_ref, w1_ref, b1_ref, w2_ref, b2_ref, w3_ref, b3_ref, o_ref):
    # Hoist bias reads (f32) once per grid step.
    b1 = b1_ref[...]
    b2 = b2_ref[...]
    b3 = b3_ref[...]

    cd = w1_ref.dtype  # bf16 compute dtype for the MXU

    # x arrives as f32 straight from HBM; cast in-kernel (no separate XLA
    # cast pass over x in HBM).
    x = x_ref[...].astype(cd)

    # fc1 + relu   (bf16 MXU, f32 accumulate)
    h1 = jnp.dot(x, w1_ref[...], preferred_element_type=jnp.float32)
    h1 = jnp.maximum(h1 + b1, 0.0).astype(cd)

    # fc2 + relu
    h2 = jnp.dot(h1, w2_ref[...], preferred_element_type=jnp.float32)
    h2 = jnp.maximum(h2 + b2, 0.0).astype(cd)

    # fc3 -> narrow (tb, 4) output; HBM writeback is only 16 useful B/row.
    h3 = jnp.dot(h2, w3_ref[...], preferred_element_type=jnp.float32)
    o_ref[...] = (h3 + b3).astype(o_ref.dtype)


def prepare_params(params, compute_dtype=jnp.bfloat16):
    """One-time param prep (hoisted out of the forward path): bf16 weights, f32 biases."""
    w1, b1, w2, b2, w3, b3 = params
    # TODO(synk): for the tiny-batch latency regime the 7 param arrays could
    # additionally be packed into 1-2 lane-aligned buffers to cut DMA setups.
    return (w1.astype(compute_dtype), b1.astype(jnp.float32),
            w2.astype(compute_dtype), b2.astype(jnp.float32),
            w3.astype(compute_dtype), b3.astype(jnp.float32))


@functools.partial(jax.jit, static_argnames=("block_b",))
def blackpang_forward(x, prepared_params, *, block_b=2048):
    """x: [B, 98] float32, prepared_params from prepare_params() -> [B, 4] float32."""
    w1, b1, w2, b2, w3, b3 = prepared_params
    B, f_in = x.shape

    # Batch tile:
    #  * at most block_b rows (default 2048 keeps intermediates + the
    #    double-buffered x/out tiles well under the 16 MiB v5e scoped-VMEM
    #    default, so it is safe on v5e/v6e/v7x without a vmem_limit override)
    #  * at least 2 grid steps whenever B > 8, so on v7x the "parallel" batch
    #    axis actually gets split across both TensorCores.
    half = -(-B // 2)                      # ceil(B / 2)
    tb = min(block_b, _round_up(half, 8))  # sublane-aligned
    if tb >= B:                            # tiny batch (B <= 8): one exact full block
        tb = B
    grid = (pl.cdiv(B, tb),)               # partial last block: padded read, masked store

    # Weights/biases: constant index_map -> DMA'd once, resident in VMEM
    # across all grid steps.
    # TODO(synk): pipeline_mode=pl.Buffered(1) on these resident specs would
    # shave ~0.2 MB of double-buffer VMEM; omitted (micro-win, VMEM not tight).
    resident = lambda shape: pl.BlockSpec(shape, lambda i: (0, 0))

    return pl.pallas_call(
        _mlp_kernel,
        out_shape=jax.ShapeDtypeStruct((B, OUT_DIM), jnp.float32),
        grid_spec=pltpu.PrefetchScalarGridSpec(
            num_scalar_prefetch=0,
            grid=grid,
            in_specs=[
                pl.BlockSpec((tb, f_in), lambda i: (i, 0)),  # x: batch-tiled, f32
                resident(w1.shape), resident(b1.shape),
                resident(w2.shape), resident(b2.shape),
                resident(w3.shape), resident(b3.shape),
            ],
            out_specs=pl.BlockSpec((tb, OUT_DIM), lambda i: (i, 0)),
        ),
        compiler_params=pltpu.CompilerParams(
            dimension_semantics=("parallel",),
        ),
    )(x, w1, b1, w2, b2, w3, b3)


def init_params(key):
    """Deterministic init mimicking nn.Linear (uniform +/- 1/sqrt(fan_in))."""
    dims = [(IN_DIM, H1_DIM), (H1_DIM, H2_DIM), (H2_DIM, OUT_DIM)]
    params = []
    for fan_in, fan_out in dims:
        kw, kb, key = jax.random.split(key, 3)
        bound = 1.0 / (fan_in ** 0.5)
        w = jax.random.uniform(kw, (fan_in, fan_out), jnp.float32, -bound, bound)
        b = jax.random.uniform(kb, (1, fan_out), jnp.float32, -bound, bound)
        params.extend([w, b])
    return tuple(params)


def reference_forward_bf16(x, params):
    """Same math as the kernel: bf16 inputs/weights, f32 accumulation, f32 bias add."""
    w1, b1, w2, b2, w3, b3 = params
    cd = jnp.bfloat16
    h = jnp.dot(x.astype(cd), w1.astype(cd), preferred_element_type=jnp.float32) + b1
    h = jnp.maximum(h, 0.0).astype(cd)
    h = jnp.dot(h, w2.astype(cd), preferred_element_type=jnp.float32) + b2
    h = jnp.maximum(h, 0.0).astype(cd)
    return jnp.dot(h, w3.astype(cd), preferred_element_type=jnp.float32) + b3


def reference_forward_f32(x, params):
    w1, b1, w2, b2, w3, b3 = params
    h = jnp.maximum(x @ w1 + b1, 0.0)
    h = jnp.maximum(h @ w2 + b2, 0.0)
    return h @ w3 + b3


if __name__ == "__main__":
    key = jax.random.PRNGKey(0)
    kx, kp = jax.random.split(key)
    params = init_params(kp)
    prepared = prepare_params(params)

    # Small test: single exact tile.
    batch = 8
    x = jax.random.normal(kx, (batch, IN_DIM), dtype=jnp.float32)
    out = jax.block_until_ready(blackpang_forward(x, prepared))
    assert out.shape == (batch, OUT_DIM), out.shape
    ref_bf16 = reference_forward_bf16(x, params)
    ref_f32 = reference_forward_f32(x, params)
    assert jnp.allclose(out, ref_bf16, atol=2e-2, rtol=2e-2), "mismatch vs bf16 reference"
    assert jnp.allclose(out, ref_f32, atol=5e-2, rtol=5e-2), "mismatch vs f32 reference"

    # Larger, non-multiple batch with a small tile: multi-step grid + partial last block.
    batch2 = 300
    x2 = jax.random.normal(jax.random.PRNGKey(1), (batch2, IN_DIM), dtype=jnp.float32)
    out2 = jax.block_until_ready(blackpang_forward(x2, prepared, block_b=128))
    assert out2.shape == (batch2, OUT_DIM), out2.shape
    assert jnp.allclose(out2, reference_forward_bf16(x2, params), atol=2e-2, rtol=2e-2), \
        "mismatch vs bf16 reference (tiled, partial last block)"

    # Same batch with the default tile: exercises the 2-step (megacore) sizing path.
    out3 = jax.block_until_ready(blackpang_forward(x2, prepared))
    assert out3.shape == (batch2, OUT_DIM), out3.shape
    assert jnp.allclose(out3, reference_forward_bf16(x2, params), atol=2e-2, rtol=2e-2), \
        "mismatch vs bf16 reference (default tile)"

    print("KERNEL_OK")
</pallas_src>

<mosaic_0001>
module attributes {stable_mosaic.version = 11 : i64} {
  func.func @_mlp_kernel(%arg0: i32, %arg1: memref<8x98xf32, #tpu.memory_space<vmem>>, %arg2: memref<98x200xbf16, #tpu.memory_space<vmem>>, %arg3: memref<1x200xf32, #tpu.memory_space<vmem>>, %arg4: memref<200x128xbf16, #tpu.memory_space<vmem>>, %arg5: memref<1x128xf32, #tpu.memory_space<vmem>>, %arg6: memref<128x4xbf16, #tpu.memory_space<vmem>>, %arg7: memref<1x4xf32, #tpu.memory_space<vmem>>, %arg8: memref<8x4xf32, #tpu.memory_space<vmem>>) attributes {dimension_semantics = [#tpu.dimension_semantics<parallel>], iteration_bounds = array<i64: 1>, scalar_prefetch = 0 : i64, scratch_operands = 0 : i64, tpu.core_type = #tpu.core_type<tc>, window_params = [{transform_indices = @transform_0, window_bounds = array<i64: 8, 98>}, {pipeline_mode = #tpu.pipeline_mode<synchronous>, transform_indices = @transform_1, window_bounds = array<i64: 98, 200>}, {pipeline_mode = #tpu.pipeline_mode<synchronous>, transform_indices = @transform_2, window_bounds = array<i64: 1, 200>}, {pipeline_mode = #tpu.pipeline_mode<synchronous>, transform_indices = @transform_3, window_bounds = array<i64: 200, 128>}, {pipeline_mode = #tpu.pipeline_mode<synchronous>, transform_indices = @transform_4, window_bounds = array<i64: 1, 128>}, {pipeline_mode = #tpu.pipeline_mode<synchronous>, transform_indices = @transform_5, window_bounds = array<i64: 128, 4>}, {pipeline_mode = #tpu.pipeline_mode<synchronous>, transform_indices = @transform_6, window_bounds = array<i64: 1, 4>}, {transform_indices = @transform_7, window_bounds = array<i64: 8, 4>}]} {
    %c0 = arith.constant 0 : index
    %c0_0 = arith.constant 0 : index
    %0 = vector.load %arg3[%c0, %c0_0] : memref<1x200xf32, #tpu.memory_space<vmem>>, vector<1x200xf32>
    %c0_1 = arith.constant 0 : index
    %c0_2 = arith.constant 0 : index
    %1 = vector.load %arg5[%c0_1, %c0_2] : memref<1x128xf32, #tpu.memory_space<vmem>>, vector<1x128xf32>
    %c0_3 = arith.constant 0 : index
    %c0_4 = arith.constant 0 : index
    %2 = vector.load %arg7[%c0_3, %c0_4] : memref<1x4xf32, #tpu.memory_space<vmem>>, vector<1x4xf32>
    %c0_5 = arith.constant 0 : index
    %c0_6 = arith.constant 0 : index
    %3 = vector.load %arg1[%c0_5, %c0_6] : memref<8x98xf32, #tpu.memory_space<vmem>>, vector<8x98xf32>
    %4 = arith.truncf %3 : vector<8x98xf32> to vector<8x98xbf16>
    %c0_7 = arith.constant 0 : index
    %c0_8 = arith.constant 0 : index
    %5 = vector.load %arg2[%c0_7, %c0_8] : memref<98x200xbf16, #tpu.memory_space<vmem>>, vector<98x200xbf16>
    %cst = arith.constant dense<0.000000e+00> : vector<8x200xf32>
    %6 = tpu.matmul %4, %5, %cst {dimension_numbers = #tpu.dot_dimension_numbers<[1], [0], [0], [1], [0, 0, 1, 1], [], []>} : vector<8x98xbf16>, vector<98x200xbf16>, vector<8x200xf32> -> vector<8x200xf32>
    %7 = vector.broadcast %0 : vector<1x200xf32> to vector<8x200xf32>
    %8 = arith.addf %6, %7 : vector<8x200xf32>
    %cst_9 = arith.constant 0.000000e+00 : f32
    %9 = vector.broadcast %cst_9 : f32 to vector<8x200xf32>
    %10 = arith.maximumf %8, %9 : vector<8x200xf32>
    %11 = arith.truncf %10 : vector<8x200xf32> to vector<8x200xbf16>
    %c0_10 = arith.constant 0 : index
    %c0_11 = arith.constant 0 : index
    %12 = vector.load %arg4[%c0_10, %c0_11] : memref<200x128xbf16, #tpu.memory_space<vmem>>, vector<200x128xbf16>
    %cst_12 = arith.constant dense<0.000000e+00> : vector<8x128xf32>
    %13 = tpu.matmul %11, %12, %cst_12 {dimension_numbers = #tpu.dot_dimension_numbers<[1], [0], [0], [1], [0, 0, 1, 1], [], []>} : vector<8x200xbf16>, vector<200x128xbf16>, vector<8x128xf32> -> vector<8x128xf32>
    %14 = vector.broadcast %1 : vector<1x128xf32> to vector<8x128xf32>
    %15 = arith.addf %13, %14 : vector<8x128xf32>
    %cst_13 = arith.constant 0.000000e+00 : f32
    %16 = vector.broadcast %cst_13 : f32 to vector<8x128xf32>
    %17 = arith.maximumf %15, %16 : vector<8x128xf32>
    %18 = arith.truncf %17 : vector<8x128xf32> to vector<8x128xbf16>
    %c0_14 = arith.constant 0 : index
    %c0_15 = arith.constant 0 : index
    %19 = vector.load %arg6[%c0_14, %c0_15] : memref<128x4xbf16, #tpu.memory_space<vmem>>, vector<128x4xbf16>
    %cst_16 = arith.constant dense<0.000000e+00> : vector<8x4xf32>
    %20 = tpu.matmul %18, %19, %cst_16 {dimension_numbers = #tpu.dot_dimension_numbers<[1], [0], [0], [1], [0, 0, 1, 1], [], []>} : vector<8x128xbf16>, vector<128x4xbf16>, vector<8x4xf32> -> vector<8x4xf32>
    %21 = vector.broadcast %2 : vector<1x4xf32> to vector<8x4xf32>
    %22 = arith.addf %20, %21 : vector<8x4xf32>
    %c0_17 = arith.constant 0 : index
    %c0_18 = arith.constant 0 : index
    %23 = vector.load %arg8[%c0_17, %c0_18] : memref<8x4xf32, #tpu.memory_space<vmem>>, vector<8x4xf32>
    tpu.vector_store %arg8[%c0_17, %c0_18], %22 {strides = array<i32>} : memref<8x4xf32, #tpu.memory_space<vmem>>, vector<8x4xf32>,
    return
  }
  func.func @transform_0(%arg0: i32) -> (i32, i32) {
    %c0_i32 = arith.constant 0 : i32
    %c0_i32_0 = arith.constant 0 : i32
    return %arg0, %c0_i32 : i32, i32
  }
  func.func @transform_1(%arg0: i32) -> (i32, i32) {
    %c0_i32 = arith.constant 0 : i32
    %c0_i32_0 = arith.constant 0 : i32
    %c0_i32_1 = arith.constant 0 : i32
    return %c0_i32, %c0_i32_0 : i32, i32
  }
  func.func @transform_2(%arg0: i32) -> (i32, i32) {
    %c0_i32 = arith.constant 0 : i32
    %c0_i32_0 = arith.constant 0 : i32
    %c0_i32_1 = arith.constant 0 : i32
    return %c0_i32, %c0_i32_0 : i32, i32
  }
  func.func @transform_3(%arg0: i32) -> (i32, i32) {
    %c0_i32 = arith.constant 0 : i32
    %c0_i32_0 = arith.constant 0 : i32
    %c0_i32_1 = arith.constant 0 : i32
    return %c0_i32, %c0_i32_0 : i32, i32
  }
  func.func @transform_4(%arg0: i32) -> (i32, i32) {
    %c0_i32 = arith.constant 0 : i32
    %c0_i32_0 = arith.constant 0 : i32
    %c0_i32_1 = arith.constant 0 : i32
    return %c0_i32, %c0_i32_0 : i32, i32
  }
  func.func @transform_5(%arg0: i32) -> (i32, i32) {
    %c0_i32 = arith.constant 0 : i32
    %c0_i32_0 = arith.constant 0 : i32
    %c0_i32_1 = arith.constant 0 : i32
    return %c0_i32, %c0_i32_0 : i32, i32
  }
  func.func @transform_6(%arg0: i32) -> (i32, i32) {
    %c0_i32 = arith.constant 0 : i32
    %c0_i32_0 = arith.constant 0 : i32
    %c0_i32_1 = arith.constant 0 : i32
    return %c0_i32, %c0_i32_0 : i32, i32
  }
  func.func @transform_7(%arg0: i32) -> (i32, i32) {
    %c0_i32 = arith.constant 0 : i32
    %c0_i32_0 = arith.constant 0 : i32
    return %arg0, %c0_i32 : i32, i32
  }
}

</mosaic_0001>

<bundles_post_ra>
// kernel: blackpang_forward.1
= control target key start
LH: loop header
LB: loop body
LE: loop exit
PB: predicated region body
PF: predicated region fallthrough
CT: control target
= control target key end

     0   :  { %v562_v1 = vmov 0   ;;  %vm125_vm0 = vcmask 1040384   ;;  %vm121_vm1 = vcmask 801792   ;;  %vm287_vm2 = vcmask 1043456   ;;  %s736_s1 = inlined_call_operand.vmem [shape: bf16[98,200], index: 1, kind: input, shape index: {}]   ;;  %s737_s3 = inlined_call_operand.vmem [shape: bf16[200,128], index: 3, kind: input, shape index: {}]   ;;  %s738_s0 = inlined_call_operand.vmem [shape: f32[8,98], index: 0, kind: input, shape index: {}]   ;;  %s739_s5 = inlined_call_operand.vmem [shape: bf16[128,4], index: 5, kind: input, shape index: {}]   ;;  %s740_s2 = inlined_call_operand.vmem [shape: f32[1,200], index: 2, kind: input, shape index: {}]   ;;  %s741_s4 = inlined_call_operand.vmem [shape: f32[1,128], index: 4, kind: input, shape index: {}]   ;;  %s742_s6 = inlined_call_operand.vmem [shape: f32[1,4], index: 6, kind: input, shape index: {}]   ;;  %s743_s7 = inlined_call_operand.vmem [shape: f32[8,4], index: 7, kind: output, shape index: {}]  }
   0x1   :  { %v521_v0 = vld [vmem:[%s736_s1 + $0x4] ss:$8 sps:$4 sm:$0xff]   ;;  %164 = vmatprep.mubr.bf16.mxu0 %v562_v1  ;;  %291 = vmatprep.subr.bf16.mxu1 %v562_v1  ;;  %v523_v2 = vld [vmem:[%s736_s1] ss:$8 sps:$4 sm:$0xff]   ;;  %v524_v3 = vld [vmem:[%s736_s1 + $0x14] ss:$8 sps:$4 sm:$0xff]   ;;  %v46_v40 = vlaneseq }
   0x2   :  { %132 = vmatprep.subr.bf16.mxu0 %v521_v0  ;;  %v526_v4 = vld [vmem:[%s736_s1 + $0x10] ss:$8 sps:$4 sm:$0xff]   ;;  %v527_v5 = vld [vmem:[%s736_s1 + $0x24] ss:$8 sps:$4 sm:$0xff]   ;;  %v529_v6 = vld [vmem:[%s736_s1 + $0x20] ss:$8 sps:$4 sm:$0xff]  }
   0x3   :  { %133 = vmatpush1.bf16.msra.mxu0 %v523_v2  ;;  %v530_v7 = vld [vmem:[%s736_s1 + $0x34] ss:$8 sps:$4 sm:$0xff]   ;;  %v541_v8 = vld [vmem:[%s737_s3] sm:$0xff]   ;;  %v532_v9 = vld [vmem:[%s736_s1 + $0x30] ss:$8 sps:$4 sm:$0xff]   ;;  %v563_v33 = vmov 0.0  }
   0x4   :  { %134 = vmatprep.subr.bf16.mxu0 %v524_v3  ;;  %292 = vmatpush1.bf16.msra.mxu1 %v541_v8  ;;  %v542_v10 = vld [vmem:[%s737_s3 + $0x8] sm:$0xff]   ;;  %v543_v13 = vld [vmem:[%s737_s3 + $0x10] sm:$0xff]   ;;  %v44_v15 = vld [vmem:[%s736_s1 + $0x60] sm:$0x11]  ;;  %v47_v41 = vshrl.u32 %v46_v40, 7  ;;  %vm283_vm3 = vcmask 588800  }
   0x5   :  { %v533_v11 = vld [vmem:[%s736_s1 + $0x44] ss:$8 sps:$4 sm:$0xff]   ;;  %293 = vmatprep.subr.bf16.mxu1 %v562_v1  ;;  %v535_v12 = vld [vmem:[%s736_s1 + $0x40] ss:$8 sps:$4 sm:$0xff]   ;;  %v536_v14 = vld [vmem:[%s736_s1 + $0x54] ss:$8 sps:$4 sm:$0xff]   ;;  %v462_v18 = vcombine.high %v44_v15, %v44_v15  ;;  %v461_v19 = vcombine.low %v44_v15, %v44_v15 }
   0x6   :  { %v538_v16 = vld [vmem:[%s736_s1 + $0x50] ss:$8 sps:$4 sm:$0xff]   ;;  %v30_v20 = vld [vmem:[%s738_s0] sm:$0xff]  ;;  %v546_v24 = vld [vmem:[%s737_s3 + $0x28] sm:$0xff]   ;;  %v48_v42 = vsub.s32 0, %v47_v41  ;;  %v52_v44 = vsub.s32 1, %v47_v41 }
   0x7   :  { %135 = vmatpush1.bf16.msra.mxu0 %v526_v4  ;;  %v544_v17 = vld [vmem:[%s737_s3 + $0x18] sm:$0xff]   ;;  %v545_v21 = vld [vmem:[%s737_s3 + $0x20] sm:$0xff]   ;;  %v127_v22 = vsel %vm125_vm0, %v461_v19, 0  ;;  %v31_v23 = vpack.c.bf16 %v30_v20, %v30_v20  ;;  %v547_v25 = vld [vmem:[%s737_s3 + $0x30] sm:$0xff]   ;;  %vm564_vm4 = vmmov 0   ;;  %vm443_vm5 = vcmask 31744  }
   0x8   :  { %136 = vmatprep.subr.bf16.mxu0 %v527_v5  ;;  %294 = vmatpush1.bf16.msra.mxu1 %v542_v10  ;;  %v548_v26 = vld [vmem:[%s737_s3 + $0x38] sm:$0xff]   ;;  %v549_v27 = vld [vmem:[%s737_s3 + $0x40] sm:$0xff]   ;;  %v550_v28 = vld [vmem:[%s737_s3 + $0x48] sm:$0xff]  }
   0x9   :  { %295 = vmatprep.subr.bf16.mxu1 %v562_v1  ;;  %v551_v29 = vld [vmem:[%s737_s3 + $0x50] sm:$0xff]   ;;  %v552_v30 = vld [vmem:[%s737_s3 + $0x58] sm:$0xff]   ;;  %v553_v31 = vld [vmem:[%s737_s3 + $0x60] ss:$0 sps:$4 sm:$0xff]  }
   0xa   :  { %v289_v32 = vsel %vm287_vm2, %v553_v31, 0  ;;  %v554_v34 = vld [vmem:[%s739_s5] sm:$0xff]   ;;  %v555_v35 = vld [vmem:[%s739_s5 + $0x8] sm:$0xff]   ;;  %v556_v36 = vld [vmem:[%s739_s5 + $0x10] sm:$0xff]  }
   0xb   :  { %137 = vmatpush1.bf16.msra.mxu0 %v529_v6  ;;  %v557_v37 = vld [vmem:[%s739_s5 + $0x18] sm:$0xff]   ;;  %v558_v38 = vld [vmem:[%s739_s5 + $0x20] sm:$0xff]   ;;  %v559_v39 = vld [vmem:[%s739_s5 + $0x28] sm:$0xff]  }
   0xc   :  { %138 = vmatprep.subr.bf16.mxu0 %v530_v7  ;;  %296 = vmatpush1.bf16.msra.mxu1 %v543_v13  ;;  %v27_v43 = vld [vmem:[%s740_s2] sm:$0x3]  ;;  %v560_v57 = vld [vmem:[%s739_s5 + $0x30] sm:$0xff]   ;;  %v561_v58 = vld [vmem:[%s739_s5 + $0x38] sm:$0xff]  }
   0xd   :  { %297 = vmatprep.subr.bf16.mxu1 %v562_v1  ;;  %v49_v45 = vrot.slane %v27_v43, %v48_v42  ;;  %v53_v46 = vrot.slane %v27_v43, %v52_v44  ;;  %v465_v59 = vld [vmem:[%s741_s4] ss:$0 sm:$0xff] }
   0xe   :  { %v480_v3 = vld [vmem:[%s742_s6] ss:$0 sm:$0xff] }
   0xf   :  { %139 = vmatpush1.bf16.msra.mxu0 %v532_v9 }
  0x10   :  { %140 = vmatprep.subr.bf16.mxu0 %v533_v11  ;;  %298 = vmatpush1.bf16.msra.mxu1 %v544_v17 }
  0x11   :  { %299 = vmatprep.subr.bf16.mxu1 %v562_v1 }
  0x13   :  { %141 = vmatpush1.bf16.msra.mxu0 %v535_v12 }
  0x14   :  { %142 = vmatprep.subr.bf16.mxu0 %v536_v14  ;;  %300 = vmatpush1.bf16.msra.mxu1 %v545_v21 }
  0x15   :  { %301 = vmatprep.subr.bf16.mxu1 %v562_v1 }
  0x17   :  { %143 = vmatpush1.bf16.msra.mxu0 %v538_v16 }
  0x18   :  { %463 = vmatprep.subr.msk.bf16.mxu0 %vm125_vm0, %v462_v18  ;;  %302 = vmatpush1.bf16.msra.mxu1 %v546_v24 }
  0x19   :  { %303 = vmatprep.subr.bf16.mxu1 %v562_v1 }
  0x1b   :  { %145 = vmatpush1.bf16.msra.mxu0 %v127_v22 }
  0x1c   :  { %304 = vmatpush1.bf16.msra.mxu1 %v547_v25  ;;  %498 = vmatprep.subr.bf16.mxu0 %v563_v33 }
  0x1d   :  { %305 = vmatprep.subr.bf16.mxu1 %v562_v1 }
  0x1e   :  { %464 = vmatmul.mubr.msk.bf16.vlgmr.msra.gmra.mrb[0].mxu0 %vm121_vm1, %v31_v23 }
  0x1f   :  { %499 = vmatpush3.bf16.msra.mxu0 %v554_v34  ;;  %514 = vmatprep.mubr.msk.bf16.mxu0 %vm564_vm4, %v563_v33 }
  0x20   :  { %306 = vmatpush1.bf16.msra.mxu1 %v548_v26  ;;  %500 = vmatprep.subr.bf16.mxu0 %v563_v33 }
  0x21   :  { %307 = vmatprep.subr.bf16.mxu1 %v562_v1 }
  0x23   :  { %501 = vmatpush3.bf16.msra.mxu0 %v555_v35 }
  0x24   :  { %308 = vmatpush1.bf16.msra.mxu1 %v549_v27  ;;  %502 = vmatprep.subr.bf16.mxu0 %v563_v33 }
  0x25   :  { %309 = vmatprep.subr.bf16.mxu1 %v562_v1 }
  0x27   :  { %503 = vmatpush3.bf16.msra.mxu0 %v556_v36 }
  0x28   :  { %310 = vmatpush1.bf16.msra.mxu1 %v550_v28  ;;  %504 = vmatprep.subr.bf16.mxu0 %v563_v33 }
  0x29   :  { %311 = vmatprep.subr.bf16.mxu1 %v562_v1 }
  0x2b   :  { %505 = vmatpush3.bf16.msra.mxu0 %v557_v37 }
  0x2c   :  { %312 = vmatpush1.bf16.msra.mxu1 %v551_v29  ;;  %506 = vmatprep.subr.bf16.mxu0 %v563_v33 }
  0x2d   :  { %313 = vmatprep.subr.bf16.mxu1 %v562_v1 }
  0x2f   :  { %507 = vmatpush3.bf16.msra.mxu0 %v558_v38 }
  0x30   :  { %314 = vmatpush1.bf16.msra.mxu1 %v552_v30  ;;  %508 = vmatprep.subr.bf16.mxu0 %v563_v33 }
  0x31   :  { %315 = vmatprep.subr.bf16.mxu1 %v562_v1 }
  0x33   :  { %509 = vmatpush3.bf16.msra.mxu0 %v559_v39 }
  0x34   :  { %316 = vmatpush1.bf16.msra.mxu1 %v289_v32  ;;  %510 = vmatprep.subr.bf16.mxu0 %v563_v33 }
  0x37   :  { %511 = vmatpush3.bf16.msra.mxu0 %v560_v57 }
  0x38   :  { %512 = vmatprep.subr.bf16.mxu0 %v563_v33 }
  0x3b   :  { %513 = vmatpush3.bf16.msra.mxu0 %v561_v58 }
  0xf1   :  { %v166_v47 = vpop.f32.mrb[0].mxu0 }
  0xf2   :  { %v167_v48 = vadd.f32 %v166_v47, %v49_v45  ;;  %v168_v49 = vpop.f32.mrb[1].mxu0 }
  0xf3   :  { %v169_v50 = vadd.f32 %v168_v49, %v53_v46  ;;  %v170_v51 = vpop.f32.mrb[2].mxu0 }
  0xf4   :  { %v173_v52 = vmax.f32 %v167_v48, 0.0  ;;  %v171_v53 = vpop.f32.mrb[3].mxu0 }
  0xf5   :  { %v174_v54 = vmax.f32 %v169_v50, 0.0 }
  0xf6   :  { %v175_v56 = vpack.c.bf16 %v173_v52, %v173_v52 }
  0xf7   :  { %v176_v55 = vpack.c.bf16 %v174_v54, %v174_v54 }
  0xf9   :  { %479 = vmatprep.mubr.msk.bf16.mxu1 %vm283_vm3, %v176_v55 }
  0xfa   :  { %324 = vmatmul.mubr.bf16.vlgmr.msra.gmra.mrb[0].mxu1 %v175_v56 }
 0x1cd   :  { %v325_v60 = vpop.f32.mrb[0].mxu1 }
 0x1ce   :  { %v326_v61 = vadd.f32 %v465_v59, %v325_v60  ;;  %v327_v62 = vpop.f32.mrb[1].mxu1 }
 0x1cf   :  { %v328_v63 = vpop.f32.mrb[2].mxu1 }
 0x1d0   :  { %v331_v0 = vmax.f32 %v326_v61, 0.0  ;;  %v329_v1 = vpop.f32.mrb[3].mxu1 }
 0x1d2   :  { %v332_v2 = vpack.c.bf16 %v331_v0, %v331_v0 }
 0x1d4   :  { %515 = vmatmul.mubr.bf16.vlgmr.msra.gmra.mrb[4].mxu0 %v332_v2 }
 0x2a7   :  { %v437_v4 = vpop.f32.mrb[4].mxu0 }
 0x2a8   :  { %v438_v5 = vadd.f32 %v480_v3, %v437_v4  ;;  %v516_v6 = vpop.f32.mrb[5].mxu0 }
 0x2a9   :  { %v440_v7 = vpop.f32.mrb[6].mxu0 }
 0x2aa   :  { %444 = vst.msk [vmem:[%s743_s7] sm:$0xff] %vm443_vm5, %v438_v5  ;;  %v517_v8 = vpop.f32.mrb[7].mxu0 }

</bundles_post_ra>
